<compile_context>
chip_gen: v7x
topology: tpu7x:2x2x1
jax: 0.10.0
libtpu: 0.0.40
codegen_flags: <defaults>
</compile_context>

<pallas_src>
import functools

import jax
import jax.numpy as jnp
from jax.experimental import pallas as pl
from jax.experimental.pallas import tpu as pltpu


# ----------------------------------------------------------------------------
# Fused Pallas kernel: 4 additive coupling layers + diagonal scaling.
# ----------------------------------------------------------------------------
def _nice_fused_kernel(xe_ref, xo_ref, *rest):
    """rest = 24 weight/bias refs (4 layers x 6), exp_scale_even,
    exp_scale_odd, then the two output refs (y_even, y_odd)."""
    params = rest[:24]
    es_e_ref, es_o_ref = rest[24], rest[25]
    ye_ref, yo_ref = rest[26], rest[27]

    def mlp(x, layer):
        w1, b1, w2, b2, w3, b3 = params[layer * 6:(layer + 1) * 6]
        h = jnp.dot(x, w1[...], preferred_element_type=jnp.float32) + b1[...]
        h = jnp.maximum(h, 0.0)
        h = jnp.dot(h, w2[...], preferred_element_type=jnp.float32) + b2[...]
        h = jnp.maximum(h, 0.0)
        return jnp.dot(h, w3[...], preferred_element_type=jnp.float32) + b3[...]

    # Running activation stays in vregs/VMEM for the whole fused body; the two
    # halves never touch HBM between layers.
    xe = xe_ref[...]
    xo = xo_ref[...]
    xo = xo + mlp(xe, 0)   # layer1, partition 'even': odd half += m(even half)
    xe = xe + mlp(xo, 1)   # layer2, partition 'odd' : even half += m(odd half)
    xo = xo + mlp(xe, 2)   # layer3, partition 'even'
    xe = xe + mlp(xo, 3)   # layer4, partition 'odd'

    # Diagonal scaling fused into the epilogue (exp(scale) precomputed outside).
    ye_ref[...] = (xe * es_e_ref[...]).astype(ye_ref.dtype)
    yo_ref[...] = (xo * es_o_ref[...]).astype(yo_ref.dtype)


# ----------------------------------------------------------------------------
# Wrapper: NICEModel.forward  ->  (ys, log_det_J)
# ----------------------------------------------------------------------------
def nice_forward(xs, layer_params, scale, *, block_b=256):
    B, dim = xs.shape
    half = dim // 2

    # --- glue (runs once, outside the fused hot path) ------------------------
    # De-interleave into two contiguous halves.
    x2 = xs.reshape(B, half, 2)
    xe, xo = x2[:, :, 0], x2[:, :, 1]

    log_det_J = jnp.sum(scale)
    exp_scale = jnp.exp(scale).reshape(1, half, 2)
    es_e, es_o = exp_scale[:, :, 0], exp_scale[:, :, 1]

    # Batch tiling: one tile if the batch is small, otherwise 8-aligned tiles
    # (pad the batch so the grid divides evenly; padded rows are discarded).
    if B <= block_b:
        tb, b_pad = B, B
    else:
        tb = max(8, (block_b // 8) * 8)
        b_pad = ((B + tb - 1) // tb) * tb
    if b_pad != B:
        pad = b_pad - B
        xe = jnp.pad(xe, ((0, pad), (0, 0)))
        xo = jnp.pad(xo, ((0, pad), (0, 0)))

    flat_params = [t for layer in layer_params for t in layer]

    act_spec = pl.BlockSpec((tb, half), lambda i: (i, 0))
    # Weights / biases / exp(scale): full tensors with a constant block index
    # -> fetched once, VMEM-resident across all grid steps.
    res_specs = [pl.BlockSpec(p.shape, lambda i: (0, 0))
                 for p in flat_params + [es_e, es_o]]

    ye, yo = pl.pallas_call(
        _nice_fused_kernel,
        grid=(b_pad // tb,),
        in_specs=[act_spec, act_spec] + res_specs,
        out_specs=(pl.BlockSpec((tb, half), lambda i: (i, 0)),
                   pl.BlockSpec((tb, half), lambda i: (i, 0))),
        out_shape=(jax.ShapeDtypeStruct((b_pad, half), jnp.float32),
                   jax.ShapeDtypeStruct((b_pad, half), jnp.float32)),
        compiler_params=pltpu.CompilerParams(
            dimension_semantics=("parallel",)),
    )(xe, xo, *flat_params, es_e, es_o)

    # Re-interleave once.
    ys = jnp.stack([ye[:B], yo[:B]], axis=-1).reshape(B, dim)
    return ys, log_det_J


# ----------------------------------------------------------------------------
# Pure-JAX reference (for a quick sanity check)
# ----------------------------------------------------------------------------
def _mlp_ref(x, w1, b1, w2, b2, w3, b3):
    h = jnp.maximum(x @ w1 + b1, 0.0)
    h = jnp.maximum(h @ w2 + b2, 0.0)
    return h @ w3 + b3


def nice_forward_ref(xs, layer_params, scale):
    partitions = ("even", "odd", "even", "odd")
    ys = xs
    for p, prm in zip(partitions, layer_params):
        if p == "even":
            first, second = ys[:, 0::2], ys[:, 1::2]
        else:
            first, second = ys[:, 1::2], ys[:, 0::2]
        new_second = second + _mlp_ref(first, *prm)
        out = jnp.zeros_like(ys)
        if p == "even":
            out = out.at[:, 0::2].set(first).at[:, 1::2].set(new_second)
        else:
            out = out.at[:, 1::2].set(first).at[:, 0::2].set(new_second)
        ys = out
    return ys * jnp.exp(scale), jnp.sum(scale)


# ----------------------------------------------------------------------------
# Deterministic parameter init + driver
# ----------------------------------------------------------------------------
def init_params(key, input_dim, hidden_dim):
    half = input_dim // 2
    layer_params = []
    for _ in range(4):
        keys = jax.random.split(key, 7)
        key = keys[0]
        w1 = 0.1 * jax.random.normal(keys[1], (half, hidden_dim), jnp.float32)
        b1 = 0.1 * jax.random.normal(keys[2], (1, hidden_dim), jnp.float32)
        w2 = 0.1 * jax.random.normal(keys[3], (hidden_dim, hidden_dim), jnp.float32)
        b2 = 0.1 * jax.random.normal(keys[4], (1, hidden_dim), jnp.float32)
        w3 = 0.1 * jax.random.normal(keys[5], (hidden_dim, half), jnp.float32)
        b3 = 0.1 * jax.random.normal(keys[6], (1, half), jnp.float32)
        layer_params.append((w1, b1, w2, b2, w3, b3))
    # Scaling.scale is zeros in the PyTorch __init__; use small random values
    # here so the exp/sum paths are non-trivially exercised (still deterministic).
    key, sk = jax.random.split(key)
    scale = 0.05 * jax.random.normal(sk, (1, input_dim), jnp.float32)
    return layer_params, scale


if __name__ == "__main__":
    B, input_dim, hidden_dim = 32, 16, 32

    key = jax.random.PRNGKey(0)
    key, xk = jax.random.split(key)
    xs = jax.random.normal(xk, (B, input_dim), jnp.float32)

    layer_params, scale = init_params(key, input_dim, hidden_dim)

    # block_b=16 -> 2 batch tiles: exercises the pipelined grid path.
    fwd = jax.jit(functools.partial(nice_forward, block_b=16))
    y, logdet = fwd(xs, layer_params, scale)
    y = jax.block_until_ready(y)
    logdet = jax.block_until_ready(logdet)

    y_ref, logdet_ref = nice_forward_ref(xs, layer_params, scale)
    assert y.shape == (B, input_dim)
    assert jnp.allclose(y, y_ref, atol=1e-4, rtol=1e-4), \
        float(jnp.max(jnp.abs(y - y_ref)))
    assert jnp.allclose(logdet, logdet_ref, atol=1e-5, rtol=1e-5)

    print("KERNEL_OK")
</pallas_src>

<mosaic_0001>
module attributes {stable_mosaic.version = 11 : i64} {
  func.func @_nice_fused_kernel(%arg0: i32, %arg1: memref<16x8xf32, #tpu.memory_space<vmem>>, %arg2: memref<16x8xf32, #tpu.memory_space<vmem>>, %arg3: memref<8x32xf32, #tpu.memory_space<vmem>>, %arg4: memref<1x32xf32, #tpu.memory_space<vmem>>, %arg5: memref<32x32xf32, #tpu.memory_space<vmem>>, %arg6: memref<1x32xf32, #tpu.memory_space<vmem>>, %arg7: memref<32x8xf32, #tpu.memory_space<vmem>>, %arg8: memref<1x8xf32, #tpu.memory_space<vmem>>, %arg9: memref<8x32xf32, #tpu.memory_space<vmem>>, %arg10: memref<1x32xf32, #tpu.memory_space<vmem>>, %arg11: memref<32x32xf32, #tpu.memory_space<vmem>>, %arg12: memref<1x32xf32, #tpu.memory_space<vmem>>, %arg13: memref<32x8xf32, #tpu.memory_space<vmem>>, %arg14: memref<1x8xf32, #tpu.memory_space<vmem>>, %arg15: memref<8x32xf32, #tpu.memory_space<vmem>>, %arg16: memref<1x32xf32, #tpu.memory_space<vmem>>, %arg17: memref<32x32xf32, #tpu.memory_space<vmem>>, %arg18: memref<1x32xf32, #tpu.memory_space<vmem>>, %arg19: memref<32x8xf32, #tpu.memory_space<vmem>>, %arg20: memref<1x8xf32, #tpu.memory_space<vmem>>, %arg21: memref<8x32xf32, #tpu.memory_space<vmem>>, %arg22: memref<1x32xf32, #tpu.memory_space<vmem>>, %arg23: memref<32x32xf32, #tpu.memory_space<vmem>>, %arg24: memref<1x32xf32, #tpu.memory_space<vmem>>, %arg25: memref<32x8xf32, #tpu.memory_space<vmem>>, %arg26: memref<1x8xf32, #tpu.memory_space<vmem>>, %arg27: memref<1x8xf32, #tpu.memory_space<vmem>>, %arg28: memref<1x8xf32, #tpu.memory_space<vmem>>, %arg29: memref<16x8xf32, #tpu.memory_space<vmem>>, %arg30: memref<16x8xf32, #tpu.memory_space<vmem>>) attributes {dimension_semantics = [#tpu.dimension_semantics<parallel>], iteration_bounds = array<i64: 2>, scalar_prefetch = 0 : i64, scratch_operands = 0 : i64, tpu.core_type = #tpu.core_type<tc>, window_params = [{transform_indices = @transform_0, window_bounds = array<i64: 16, 8>}, {transform_indices = @transform_1, window_bounds = array<i64: 16, 8>}, {pipeline_mode = #tpu.pipeline_mode<synchronous>, transform_indices = @transform_2, window_bounds = array<i64: 8, 32>}, {pipeline_mode = #tpu.pipeline_mode<synchronous>, transform_indices = @transform_3, window_bounds = array<i64: 1, 32>}, {pipeline_mode = #tpu.pipeline_mode<synchronous>, transform_indices = @transform_4, window_bounds = array<i64: 32, 32>}, {pipeline_mode = #tpu.pipeline_mode<synchronous>, transform_indices = @transform_5, window_bounds = array<i64: 1, 32>}, {pipeline_mode = #tpu.pipeline_mode<synchronous>, transform_indices = @transform_6, window_bounds = array<i64: 32, 8>}, {pipeline_mode = #tpu.pipeline_mode<synchronous>, transform_indices = @transform_7, window_bounds = array<i64: 1, 8>}, {pipeline_mode = #tpu.pipeline_mode<synchronous>, transform_indices = @transform_8, window_bounds = array<i64: 8, 32>}, {pipeline_mode = #tpu.pipeline_mode<synchronous>, transform_indices = @transform_9, window_bounds = array<i64: 1, 32>}, {pipeline_mode = #tpu.pipeline_mode<synchronous>, transform_indices = @transform_10, window_bounds = array<i64: 32, 32>}, {pipeline_mode = #tpu.pipeline_mode<synchronous>, transform_indices = @transform_11, window_bounds = array<i64: 1, 32>}, {pipeline_mode = #tpu.pipeline_mode<synchronous>, transform_indices = @transform_12, window_bounds = array<i64: 32, 8>}, {pipeline_mode = #tpu.pipeline_mode<synchronous>, transform_indices = @transform_13, window_bounds = array<i64: 1, 8>}, {pipeline_mode = #tpu.pipeline_mode<synchronous>, transform_indices = @transform_14, window_bounds = array<i64: 8, 32>}, {pipeline_mode = #tpu.pipeline_mode<synchronous>, transform_indices = @transform_15, window_bounds = array<i64: 1, 32>}, {pipeline_mode = #tpu.pipeline_mode<synchronous>, transform_indices = @transform_16, window_bounds = array<i64: 32, 32>}, {pipeline_mode = #tpu.pipeline_mode<synchronous>, transform_indices = @transform_17, window_bounds = array<i64: 1, 32>}, {pipeline_mode = #tpu.pipeline_mode<synchronous>, transform_indices = @transform_18, window_bounds = array<i64: 32, 8>}, {pipeline_mode = #tpu.pipeline_mode<synchronous>, transform_indices = @transform_19, window_bounds = array<i64: 1, 8>}, {pipeline_mode = #tpu.pipeline_mode<synchronous>, transform_indices = @transform_20, window_bounds = array<i64: 8, 32>}, {pipeline_mode = #tpu.pipeline_mode<synchronous>, transform_indices = @transform_21, window_bounds = array<i64: 1, 32>}, {pipeline_mode = #tpu.pipeline_mode<synchronous>, transform_indices = @transform_22, window_bounds = array<i64: 32, 32>}, {pipeline_mode = #tpu.pipeline_mode<synchronous>, transform_indices = @transform_23, window_bounds = array<i64: 1, 32>}, {pipeline_mode = #tpu.pipeline_mode<synchronous>, transform_indices = @transform_24, window_bounds = array<i64: 32, 8>}, {pipeline_mode = #tpu.pipeline_mode<synchronous>, transform_indices = @transform_25, window_bounds = array<i64: 1, 8>}, {pipeline_mode = #tpu.pipeline_mode<synchronous>, transform_indices = @transform_26, window_bounds = array<i64: 1, 8>}, {pipeline_mode = #tpu.pipeline_mode<synchronous>, transform_indices = @transform_27, window_bounds = array<i64: 1, 8>}, {transform_indices = @transform_28, window_bounds = array<i64: 16, 8>}, {transform_indices = @transform_29, window_bounds = array<i64: 16, 8>}]} {
    %c0 = arith.constant 0 : index
    %c0_0 = arith.constant 0 : index
    %0 = vector.load %arg1[%c0, %c0_0] : memref<16x8xf32, #tpu.memory_space<vmem>>, vector<16x8xf32>
    %c0_1 = arith.constant 0 : index
    %c0_2 = arith.constant 0 : index
    %1 = vector.load %arg2[%c0_1, %c0_2] : memref<16x8xf32, #tpu.memory_space<vmem>>, vector<16x8xf32>
    %c0_3 = arith.constant 0 : index
    %c0_4 = arith.constant 0 : index
    %2 = vector.load %arg3[%c0_3, %c0_4] : memref<8x32xf32, #tpu.memory_space<vmem>>, vector<8x32xf32>
    %cst = arith.constant dense<0.000000e+00> : vector<16x32xf32>
    %3 = tpu.matmul %0, %2, %cst {dimension_numbers = #tpu.dot_dimension_numbers<[1], [0], [0], [1], [0, 0, 1, 1], [], []>} : vector<16x8xf32>, vector<8x32xf32>, vector<16x32xf32> -> vector<16x32xf32>
    %c0_5 = arith.constant 0 : index
    %c0_6 = arith.constant 0 : index
    %4 = vector.load %arg4[%c0_5, %c0_6] : memref<1x32xf32, #tpu.memory_space<vmem>>, vector<1x32xf32>
    %5 = vector.broadcast %4 : vector<1x32xf32> to vector<16x32xf32>
    %6 = arith.addf %3, %5 : vector<16x32xf32>
    %cst_7 = arith.constant 0.000000e+00 : f32
    %7 = vector.broadcast %cst_7 : f32 to vector<16x32xf32>
    %8 = arith.maximumf %6, %7 : vector<16x32xf32>
    %c0_8 = arith.constant 0 : index
    %c0_9 = arith.constant 0 : index
    %9 = vector.load %arg5[%c0_8, %c0_9] : memref<32x32xf32, #tpu.memory_space<vmem>>, vector<32x32xf32>
    %cst_10 = arith.constant dense<0.000000e+00> : vector<16x32xf32>
    %10 = tpu.matmul %8, %9, %cst_10 {dimension_numbers = #tpu.dot_dimension_numbers<[1], [0], [0], [1], [0, 0, 1, 1], [], []>} : vector<16x32xf32>, vector<32x32xf32>, vector<16x32xf32> -> vector<16x32xf32>
    %c0_11 = arith.constant 0 : index
    %c0_12 = arith.constant 0 : index
    %11 = vector.load %arg6[%c0_11, %c0_12] : memref<1x32xf32, #tpu.memory_space<vmem>>, vector<1x32xf32>
    %12 = vector.broadcast %11 : vector<1x32xf32> to vector<16x32xf32>
    %13 = arith.addf %10, %12 : vector<16x32xf32>
    %cst_13 = arith.constant 0.000000e+00 : f32
    %14 = vector.broadcast %cst_13 : f32 to vector<16x32xf32>
    %15 = arith.maximumf %13, %14 : vector<16x32xf32>
    %c0_14 = arith.constant 0 : index
    %c0_15 = arith.constant 0 : index
    %16 = vector.load %arg7[%c0_14, %c0_15] : memref<32x8xf32, #tpu.memory_space<vmem>>, vector<32x8xf32>
    %cst_16 = arith.constant dense<0.000000e+00> : vector<16x8xf32>
    %17 = tpu.matmul %15, %16, %cst_16 {dimension_numbers = #tpu.dot_dimension_numbers<[1], [0], [0], [1], [0, 0, 1, 1], [], []>} : vector<16x32xf32>, vector<32x8xf32>, vector<16x8xf32> -> vector<16x8xf32>
    %c0_17 = arith.constant 0 : index
    %c0_18 = arith.constant 0 : index
    %18 = vector.load %arg8[%c0_17, %c0_18] : memref<1x8xf32, #tpu.memory_space<vmem>>, vector<1x8xf32>
    %19 = vector.broadcast %18 : vector<1x8xf32> to vector<16x8xf32>
    %20 = arith.addf %17, %19 : vector<16x8xf32>
    %21 = arith.addf %1, %20 : vector<16x8xf32>
    %c0_19 = arith.constant 0 : index
    %c0_20 = arith.constant 0 : index
    %22 = vector.load %arg9[%c0_19, %c0_20] : memref<8x32xf32, #tpu.memory_space<vmem>>, vector<8x32xf32>
    %cst_21 = arith.constant dense<0.000000e+00> : vector<16x32xf32>
    %23 = tpu.matmul %21, %22, %cst_21 {dimension_numbers = #tpu.dot_dimension_numbers<[1], [0], [0], [1], [0, 0, 1, 1], [], []>} : vector<16x8xf32>, vector<8x32xf32>, vector<16x32xf32> -> vector<16x32xf32>
    %c0_22 = arith.constant 0 : index
    %c0_23 = arith.constant 0 : index
    %24 = vector.load %arg10[%c0_22, %c0_23] : memref<1x32xf32, #tpu.memory_space<vmem>>, vector<1x32xf32>
    %25 = vector.broadcast %24 : vector<1x32xf32> to vector<16x32xf32>
    %26 = arith.addf %23, %25 : vector<16x32xf32>
    %cst_24 = arith.constant 0.000000e+00 : f32
    %27 = vector.broadcast %cst_24 : f32 to vector<16x32xf32>
    %28 = arith.maximumf %26, %27 : vector<16x32xf32>
    %c0_25 = arith.constant 0 : index
    %c0_26 = arith.constant 0 : index
    %29 = vector.load %arg11[%c0_25, %c0_26] : memref<32x32xf32, #tpu.memory_space<vmem>>, vector<32x32xf32>
    %cst_27 = arith.constant dense<0.000000e+00> : vector<16x32xf32>
    %30 = tpu.matmul %28, %29, %cst_27 {dimension_numbers = #tpu.dot_dimension_numbers<[1], [0], [0], [1], [0, 0, 1, 1], [], []>} : vector<16x32xf32>, vector<32x32xf32>, vector<16x32xf32> -> vector<16x32xf32>
    %c0_28 = arith.constant 0 : index
    %c0_29 = arith.constant 0 : index
    %31 = vector.load %arg12[%c0_28, %c0_29] : memref<1x32xf32, #tpu.memory_space<vmem>>, vector<1x32xf32>
    %32 = vector.broadcast %31 : vector<1x32xf32> to vector<16x32xf32>
    %33 = arith.addf %30, %32 : vector<16x32xf32>
    %cst_30 = arith.constant 0.000000e+00 : f32
    %34 = vector.broadcast %cst_30 : f32 to vector<16x32xf32>
    %35 = arith.maximumf %33, %34 : vector<16x32xf32>
    %c0_31 = arith.constant 0 : index
    %c0_32 = arith.constant 0 : index
    %36 = vector.load %arg13[%c0_31, %c0_32] : memref<32x8xf32, #tpu.memory_space<vmem>>, vector<32x8xf32>
    %cst_33 = arith.constant dense<0.000000e+00> : vector<16x8xf32>
    %37 = tpu.matmul %35, %36, %cst_33 {dimension_numbers = #tpu.dot_dimension_numbers<[1], [0], [0], [1], [0, 0, 1, 1], [], []>} : vector<16x32xf32>, vector<32x8xf32>, vector<16x8xf32> -> vector<16x8xf32>
    %c0_34 = arith.constant 0 : index
    %c0_35 = arith.constant 0 : index
    %38 = vector.load %arg14[%c0_34, %c0_35] : memref<1x8xf32, #tpu.memory_space<vmem>>, vector<1x8xf32>
    %39 = vector.broadcast %38 : vector<1x8xf32> to vector<16x8xf32>
    %40 = arith.addf %37, %39 : vector<16x8xf32>
    %41 = arith.addf %0, %40 : vector<16x8xf32>
    %c0_36 = arith.constant 0 : index
    %c0_37 = arith.constant 0 : index
    %42 = vector.load %arg15[%c0_36, %c0_37] : memref<8x32xf32, #tpu.memory_space<vmem>>, vector<8x32xf32>
    %cst_38 = arith.constant dense<0.000000e+00> : vector<16x32xf32>
    %43 = tpu.matmul %41, %42, %cst_38 {dimension_numbers = #tpu.dot_dimension_numbers<[1], [0], [0], [1], [0, 0, 1, 1], [], []>} : vector<16x8xf32>, vector<8x32xf32>, vector<16x32xf32> -> vector<16x32xf32>
    %c0_39 = arith.constant 0 : index
    %c0_40 = arith.constant 0 : index
    %44 = vector.load %arg16[%c0_39, %c0_40] : memref<1x32xf32, #tpu.memory_space<vmem>>, vector<1x32xf32>
    %45 = vector.broadcast %44 : vector<1x32xf32> to vector<16x32xf32>
    %46 = arith.addf %43, %45 : vector<16x32xf32>
    %cst_41 = arith.constant 0.000000e+00 : f32
    %47 = vector.broadcast %cst_41 : f32 to vector<16x32xf32>
    %48 = arith.maximumf %46, %47 : vector<16x32xf32>
    %c0_42 = arith.constant 0 : index
    %c0_43 = arith.constant 0 : index
    %49 = vector.load %arg17[%c0_42, %c0_43] : memref<32x32xf32, #tpu.memory_space<vmem>>, vector<32x32xf32>
    %cst_44 = arith.constant dense<0.000000e+00> : vector<16x32xf32>
    %50 = tpu.matmul %48, %49, %cst_44 {dimension_numbers = #tpu.dot_dimension_numbers<[1], [0], [0], [1], [0, 0, 1, 1], [], []>} : vector<16x32xf32>, vector<32x32xf32>, vector<16x32xf32> -> vector<16x32xf32>
    %c0_45 = arith.constant 0 : index
    %c0_46 = arith.constant 0 : index
    %51 = vector.load %arg18[%c0_45, %c0_46] : memref<1x32xf32, #tpu.memory_space<vmem>>, vector<1x32xf32>
    %52 = vector.broadcast %51 : vector<1x32xf32> to vector<16x32xf32>
    %53 = arith.addf %50, %52 : vector<16x32xf32>
    %cst_47 = arith.constant 0.000000e+00 : f32
    %54 = vector.broadcast %cst_47 : f32 to vector<16x32xf32>
    %55 = arith.maximumf %53, %54 : vector<16x32xf32>
    %c0_48 = arith.constant 0 : index
    %c0_49 = arith.constant 0 : index
    %56 = vector.load %arg19[%c0_48, %c0_49] : memref<32x8xf32, #tpu.memory_space<vmem>>, vector<32x8xf32>
    %cst_50 = arith.constant dense<0.000000e+00> : vector<16x8xf32>
    %57 = tpu.matmul %55, %56, %cst_50 {dimension_numbers = #tpu.dot_dimension_numbers<[1], [0], [0], [1], [0, 0, 1, 1], [], []>} : vector<16x32xf32>, vector<32x8xf32>, vector<16x8xf32> -> vector<16x8xf32>
    %c0_51 = arith.constant 0 : index
    %c0_52 = arith.constant 0 : index
    %58 = vector.load %arg20[%c0_51, %c0_52] : memref<1x8xf32, #tpu.memory_space<vmem>>, vector<1x8xf32>
    %59 = vector.broadcast %58 : vector<1x8xf32> to vector<16x8xf32>
    %60 = arith.addf %57, %59 : vector<16x8xf32>
    %61 = arith.addf %21, %60 : vector<16x8xf32>
    %c0_53 = arith.constant 0 : index
    %c0_54 = arith.constant 0 : index
    %62 = vector.load %arg21[%c0_53, %c0_54] : memref<8x32xf32, #tpu.memory_space<vmem>>, vector<8x32xf32>
    %cst_55 = arith.constant dense<0.000000e+00> : vector<16x32xf32>
    %63 = tpu.matmul %61, %62, %cst_55 {dimension_numbers = #tpu.dot_dimension_numbers<[1], [0], [0], [1], [0, 0, 1, 1], [], []>} : vector<16x8xf32>, vector<8x32xf32>, vector<16x32xf32> -> vector<16x32xf32>
    %c0_56 = arith.constant 0 : index
    %c0_57 = arith.constant 0 : index
    %64 = vector.load %arg22[%c0_56, %c0_57] : memref<1x32xf32, #tpu.memory_space<vmem>>, vector<1x32xf32>
    %65 = vector.broadcast %64 : vector<1x32xf32> to vector<16x32xf32>
    %66 = arith.addf %63, %65 : vector<16x32xf32>
    %cst_58 = arith.constant 0.000000e+00 : f32
    %67 = vector.broadcast %cst_58 : f32 to vector<16x32xf32>
    %68 = arith.maximumf %66, %67 : vector<16x32xf32>
    %c0_59 = arith.constant 0 : index
    %c0_60 = arith.constant 0 : index
    %69 = vector.load %arg23[%c0_59, %c0_60] : memref<32x32xf32, #tpu.memory_space<vmem>>, vector<32x32xf32>
    %cst_61 = arith.constant dense<0.000000e+00> : vector<16x32xf32>
    %70 = tpu.matmul %68, %69, %cst_61 {dimension_numbers = #tpu.dot_dimension_numbers<[1], [0], [0], [1], [0, 0, 1, 1], [], []>} : vector<16x32xf32>, vector<32x32xf32>, vector<16x32xf32> -> vector<16x32xf32>
    %c0_62 = arith.constant 0 : index
    %c0_63 = arith.constant 0 : index
    %71 = vector.load %arg24[%c0_62, %c0_63] : memref<1x32xf32, #tpu.memory_space<vmem>>, vector<1x32xf32>
    %72 = vector.broadcast %71 : vector<1x32xf32> to vector<16x32xf32>
    %73 = arith.addf %70, %72 : vector<16x32xf32>
    %cst_64 = arith.constant 0.000000e+00 : f32
    %74 = vector.broadcast %cst_64 : f32 to vector<16x32xf32>
    %75 = arith.maximumf %73, %74 : vector<16x32xf32>
    %c0_65 = arith.constant 0 : index
    %c0_66 = arith.constant 0 : index
    %76 = vector.load %arg25[%c0_65, %c0_66] : memref<32x8xf32, #tpu.memory_space<vmem>>, vector<32x8xf32>
    %cst_67 = arith.constant dense<0.000000e+00> : vector<16x8xf32>
    %77 = tpu.matmul %75, %76, %cst_67 {dimension_numbers = #tpu.dot_dimension_numbers<[1], [0], [0], [1], [0, 0, 1, 1], [], []>} : vector<16x32xf32>, vector<32x8xf32>, vector<16x8xf32> -> vector<16x8xf32>
    %c0_68 = arith.constant 0 : index
    %c0_69 = arith.constant 0 : index
    %78 = vector.load %arg26[%c0_68, %c0_69] : memref<1x8xf32, #tpu.memory_space<vmem>>, vector<1x8xf32>
    %79 = vector.broadcast %78 : vector<1x8xf32> to vector<16x8xf32>
    %80 = arith.addf %77, %79 : vector<16x8xf32>
    %81 = arith.addf %41, %80 : vector<16x8xf32>
    %c0_70 = arith.constant 0 : index
    %c0_71 = arith.constant 0 : index
    %82 = vector.load %arg27[%c0_70, %c0_71] : memref<1x8xf32, #tpu.memory_space<vmem>>, vector<1x8xf32>
    %83 = vector.broadcast %82 : vector<1x8xf32> to vector<16x8xf32>
    %84 = arith.mulf %81, %83 : vector<16x8xf32>
    %c0_72 = arith.constant 0 : index
    %c0_73 = arith.constant 0 : index
    %85 = vector.load %arg29[%c0_72, %c0_73] : memref<16x8xf32, #tpu.memory_space<vmem>>, vector<16x8xf32>
    tpu.vector_store %arg29[%c0_72, %c0_73], %84 {strides = array<i32>} : memref<16x8xf32, #tpu.memory_space<vmem>>, vector<16x8xf32>,
    %c0_74 = arith.constant 0 : index
    %c0_75 = arith.constant 0 : index
    %86 = vector.load %arg28[%c0_74, %c0_75] : memref<1x8xf32, #tpu.memory_space<vmem>>, vector<1x8xf32>
    %87 = vector.broadcast %86 : vector<1x8xf32> to vector<16x8xf32>
    %88 = arith.mulf %61, %87 : vector<16x8xf32>
    %c0_76 = arith.constant 0 : index
    %c0_77 = arith.constant 0 : index
    %89 = vector.load %arg30[%c0_76, %c0_77] : memref<16x8xf32, #tpu.memory_space<vmem>>, vector<16x8xf32>
    tpu.vector_store %arg30[%c0_76, %c0_77], %88 {strides = array<i32>} : memref<16x8xf32, #tpu.memory_space<vmem>>, vector<16x8xf32>,
    return
  }
  func.func @transform_0(%arg0: i32) -> (i32, i32) {
    %c0_i32 = arith.constant 0 : i32
    %c0_i32_0 = arith.constant 0 : i32
    return %arg0, %c0_i32 : i32, i32
  }
  func.func @transform_1(%arg0: i32) -> (i32, i32) {
    %c0_i32 = arith.constant 0 : i32
    %c0_i32_0 = arith.constant 0 : i32
    return %arg0, %c0_i32 : i32, i32
  }
  func.func @transform_2(%arg0: i32) -> (i32, i32) {
    %c0_i32 = arith.constant 0 : i32
    %c0_i32_0 = arith.constant 0 : i32
    %c0_i32_1 = arith.constant 0 : i32
    return %c0_i32, %c0_i32_0 : i32, i32
  }
  func.func @transform_3(%arg0: i32) -> (i32, i32) {
    %c0_i32 = arith.constant 0 : i32
    %c0_i32_0 = arith.constant 0 : i32
    %c0_i32_1 = arith.constant 0 : i32
    return %c0_i32, %c0_i32_0 : i32, i32
  }
  func.func @transform_4(%arg0: i32) -> (i32, i32) {
    %c0_i32 = arith.constant 0 : i32
    %c0_i32_0 = arith.constant 0 : i32
    %c0_i32_1 = arith.constant 0 : i32
    return %c0_i32, %c0_i32_0 : i32, i32
  }
  func.func @transform_5(%arg0: i32) -> (i32, i32) {
    %c0_i32 = arith.constant 0 : i32
    %c0_i32_0 = arith.constant 0 : i32
    %c0_i32_1 = arith.constant 0 : i32
    return %c0_i32, %c0_i32_0 : i32, i32
  }
  func.func @transform_6(%arg0: i32) -> (i32, i32) {
    %c0_i32 = arith.constant 0 : i32
    %c0_i32_0 = arith.constant 0 : i32
    %c0_i32_1 = arith.constant 0 : i32
    return %c0_i32, %c0_i32_0 : i32, i32
  }
  func.func @transform_7(%arg0: i32) -> (i32, i32) {
    %c0_i32 = arith.constant 0 : i32
    %c0_i32_0 = arith.constant 0 : i32
    %c0_i32_1 = arith.constant 0 : i32
    return %c0_i32, %c0_i32_0 : i32, i32
  }
  func.func @transform_8(%arg0: i32) -> (i32, i32) {
    %c0_i32 = arith.constant 0 : i32
    %c0_i32_0 = arith.constant 0 : i32
    %c0_i32_1 = arith.constant 0 : i32
    return %c0_i32, %c0_i32_0 : i32, i32
  }
  func.func @transform_9(%arg0: i32) -> (i32, i32) {
    %c0_i32 = arith.constant 0 : i32
    %c0_i32_0 = arith.constant 0 : i32
    %c0_i32_1 = arith.constant 0 : i32
    return %c0_i32, %c0_i32_0 : i32, i32
  }
  func.func @transform_10(%arg0: i32) -> (i32, i32) {
    %c0_i32 = arith.constant 0 : i32
    %c0_i32_0 = arith.constant 0 : i32
    %c0_i32_1 = arith.constant 0 : i32
    return %c0_i32, %c0_i32_0 : i32, i32
  }
  func.func @transform_11(%arg0: i32) -> (i32, i32) {
    %c0_i32 = arith.constant 0 : i32
    %c0_i32_0 = arith.constant 0 : i32
    %c0_i32_1 = arith.constant 0 : i32
    return %c0_i32, %c0_i32_0 : i32, i32
  }
  func.func @transform_12(%arg0: i32) -> (i32, i32) {
    %c0_i32 = arith.constant 0 : i32
    %c0_i32_0 = arith.constant 0 : i32
    %c0_i32_1 = arith.constant 0 : i32
    return %c0_i32, %c0_i32_0 : i32, i32
  }
  func.func @transform_13(%arg0: i32) -> (i32, i32) {
    %c0_i32 = arith.constant 0 : i32
    %c0_i32_0 = arith.constant 0 : i32
    %c0_i32_1 = arith.constant 0 : i32
    return %c0_i32, %c0_i32_0 : i32, i32
  }
  func.func @transform_14(%arg0: i32) -> (i32, i32) {
    %c0_i32 = arith.constant 0 : i32
    %c0_i32_0 = arith.constant 0 : i32
    %c0_i32_1 = arith.constant 0 : i32
    return %c0_i32, %c0_i32_0 : i32, i32
  }
  func.func @transform_15(%arg0: i32) -> (i32, i32) {
    %c0_i32 = arith.constant 0 : i32
    %c0_i32_0 = arith.constant 0 : i32
    %c0_i32_1 = arith.constant 0 : i32
    return %c0_i32, %c0_i32_0 : i32, i32
  }
  func.func @transform_16(%arg0: i32) -> (i32, i32) {
    %c0_i32 = arith.constant 0 : i32
    %c0_i32_0 = arith.constant 0 : i32
    %c0_i32_1 = arith.constant 0 : i32
    return %c0_i32, %c0_i32_0 : i32, i32
  }
  func.func @transform_17(%arg0: i32) -> (i32, i32) {
    %c0_i32 = arith.constant 0 : i32
    %c0_i32_0 = arith.constant 0 : i32
    %c0_i32_1 = arith.constant 0 : i32
    return %c0_i32, %c0_i32_0 : i32, i32
  }
  func.func @transform_18(%arg0: i32) -> (i32, i32) {
    %c0_i32 = arith.constant 0 : i32
    %c0_i32_0 = arith.constant 0 : i32
    %c0_i32_1 = arith.constant 0 : i32
    return %c0_i32, %c0_i32_0 : i32, i32
  }
  func.func @transform_19(%arg0: i32) -> (i32, i32) {
    %c0_i32 = arith.constant 0 : i32
    %c0_i32_0 = arith.constant 0 : i32
    %c0_i32_1 = arith.constant 0 : i32
    return %c0_i32, %c0_i32_0 : i32, i32
  }
  func.func @transform_20(%arg0: i32) -> (i32, i32) {
    %c0_i32 = arith.constant 0 : i32
    %c0_i32_0 = arith.constant 0 : i32
    %c0_i32_1 = arith.constant 0 : i32
    return %c0_i32, %c0_i32_0 : i32, i32
  }
  func.func @transform_21(%arg0: i32) -> (i32, i32) {
    %c0_i32 = arith.constant 0 : i32
    %c0_i32_0 = arith.constant 0 : i32
    %c0_i32_1 = arith.constant 0 : i32
    return %c0_i32, %c0_i32_0 : i32, i32
  }
  func.func @transform_22(%arg0: i32) -> (i32, i32) {
    %c0_i32 = arith.constant 0 : i32
    %c0_i32_0 = arith.constant 0 : i32
    %c0_i32_1 = arith.constant 0 : i32
    return %c0_i32, %c0_i32_0 : i32, i32
  }
  func.func @transform_23(%arg0: i32) -> (i32, i32) {
    %c0_i32 = arith.constant 0 : i32
    %c0_i32_0 = arith.constant 0 : i32
    %c0_i32_1 = arith.constant 0 : i32
    return %c0_i32, %c0_i32_0 : i32, i32
  }
  func.func @transform_24(%arg0: i32) -> (i32, i32) {
    %c0_i32 = arith.constant 0 : i32
    %c0_i32_0 = arith.constant 0 : i32
    %c0_i32_1 = arith.constant 0 : i32
    return %c0_i32, %c0_i32_0 : i32, i32
  }
  func.func @transform_25(%arg0: i32) -> (i32, i32) {
    %c0_i32 = arith.constant 0 : i32
    %c0_i32_0 = arith.constant 0 : i32
    %c0_i32_1 = arith.constant 0 : i32
    return %c0_i32, %c0_i32_0 : i32, i32
  }
  func.func @transform_26(%arg0: i32) -> (i32, i32) {
    %c0_i32 = arith.constant 0 : i32
    %c0_i32_0 = arith.constant 0 : i32
    %c0_i32_1 = arith.constant 0 : i32
    return %c0_i32, %c0_i32_0 : i32, i32
  }
  func.func @transform_27(%arg0: i32) -> (i32, i32) {
    %c0_i32 = arith.constant 0 : i32
    %c0_i32_0 = arith.constant 0 : i32
    %c0_i32_1 = arith.constant 0 : i32
    return %c0_i32, %c0_i32_0 : i32, i32
  }
  func.func @transform_28(%arg0: i32) -> (i32, i32) {
    %c0_i32 = arith.constant 0 : i32
    %c0_i32_0 = arith.constant 0 : i32
    return %arg0, %c0_i32 : i32, i32
  }
  func.func @transform_29(%arg0: i32) -> (i32, i32) {
    %c0_i32 = arith.constant 0 : i32
    %c0_i32_0 = arith.constant 0 : i32
    return %arg0, %c0_i32 : i32, i32
  }
}

</mosaic_0001>

<bundles_post_ra>
// kernel: nice_forward.1
= control target key start
LH: loop header
LB: loop body
LE: loop exit
PB: predicated region body
PF: predicated region fallthrough
CT: control target
= control target key end

     0   :  { %s2547_s6 = smov 1   ;;  %s2548_s10 = smov 2   ;;  %s2854_s0 = inlined_call_operand.smem [shape: u32[30], index: -1, kind: input, shape index: {}] }
   0x1   :  { %s2584_s5 = sld [smem:[%s2854_s0]]   ;;  %s2549_s14 = smov 3  }
   0x2   :  { %s2589_s9 = sld [smem:[%s2854_s0 + %s2547_s6]]   ;;  %s2550_s18 = smov 4  }
   0x3   :  { %s2594_s13 = sld [smem:[%s2854_s0 + %s2548_s10]]   ;;  %s2551_s22 = smov 5  }
   0x4   :  { %s2599_s17 = sld [smem:[%s2854_s0 + %s2549_s14]]   ;;  %s2552_s26 = smov 6  }
   0x5   :  { %s2604_s21 = sld [smem:[%s2854_s0 + %s2550_s18]]   ;;  %s2553_s30 = smov 7  }
   0x6   :  { %s2609_s25 = sld [smem:[%s2854_s0 + %s2551_s22]]   ;;  %s2554_s4 = smov 8  }
   0x7   :  { %s2614_s29 = sld [smem:[%s2854_s0 + %s2552_s26]]   ;;  %s2555_s10 = smov 9  }
   0x8   :  { %s2619_s3 = sld [smem:[%s2854_s0 + %s2553_s30]]   ;;  %s2556_s15 = smov 10  }
   0x9   :  { %s2624_s8 = sld [smem:[%s2854_s0 + %s2554_s4]]   ;;  %s2557_s20 = smov 11  }
   0xa   :  { %s2629_s14 = sld [smem:[%s2854_s0 + %s2555_s10]]   ;;  %s2558_s26 = smov 12  }
   0xb   :  { %s2634_s19 = sld [smem:[%s2854_s0 + %s2556_s15]]   ;;  %s2559_s1 = smov 13  }
   0xc   :  { %s2639_s24 = sld [smem:[%s2854_s0 + %s2557_s20]]   ;;  %s2560_s7 = smov 14  }
   0xd   :  { %s2644_s30 = sld [smem:[%s2854_s0 + %s2558_s26]]   ;;  %s2561_s15 = smov 15  }
   0xe   :  { %s2649_s6 = sld [smem:[%s2854_s0 + %s2559_s1]]   ;;  %s2562_s22 = smov 16  }
   0xf   :  { %s2654_s12 = sld [smem:[%s2854_s0 + %s2560_s7]]   ;;  %s2563_s28 = smov 17  }
  0x10   :  { %s2659_s20 = sld [smem:[%s2854_s0 + %s2561_s15]]   ;;  %s2564_s7 = smov 18  }
  0x11   :  { %s2664_s27 = sld [smem:[%s2854_s0 + %s2562_s22]]   ;;  %s2565_s15 = smov 19  }
  0x12   :  { %s2669_s4 = sld [smem:[%s2854_s0 + %s2563_s28]]   ;;  %s2566_s22 = smov 20  }
  0x13   :  { %s2567_s28 = smov 21  }
  0x14   :  { %2859 = sst [smem:[#allocation2_spill]] %s2649_s6 }
  0x15   :  { %s2674_s6 = sld [smem:[%s2854_s0 + %s2564_s7]]   ;;  %s2568_s7 = smov 22  }
  0x16   :  { %2860 = sst [smem:[#allocation3_spill]] %s2659_s20 }
  0x17   :  { %2861 = sst [smem:[#allocation4_spill]] %s2664_s27 }
  0x18   :  { %2862 = sst [smem:[#allocation5_spill]] %s2669_s4 }
  0x19   :  { %s2679_s20 = sld [smem:[%s2854_s0 + %s2565_s15]]   ;;  %s2569_s15 = smov 23  }
  0x1a   :  { %s2684_s27 = sld [smem:[%s2854_s0 + %s2566_s22]]   ;;  %s2570_s22 = smov 24  }
  0x1b   :  { %2863 = sst [smem:[#allocation6_spill]] %s2674_s6 }
  0x1c   :  { %s2689_s4 = sld [smem:[%s2854_s0 + %s2567_s28]]   ;;  %s2571_s28 = smov 25  }
  0x1d   :  { %s2694_s6 = sld [smem:[%s2854_s0 + %s2568_s7]]   ;;  %s2572_s7 = smov 26  }
  0x1f   :  { %2864 = sst [smem:[#allocation7_spill]] %s2679_s20 }
  0x20   :  { %2865 = sst [smem:[#allocation8_spill]] %s2684_s27 }
  0x21   :  { %s2699_s20 = sld [smem:[%s2854_s0 + %s2569_s15]]   ;;  %s2573_s15 = smov 27  }
  0x22   :  { %2866 = sst [smem:[#allocation9_spill]] %s2689_s4 }
  0x23   :  { %2867 = sst [smem:[#allocation10_spill]] %s2694_s6 }
  0x24   :  { %s2704_s27 = sld [smem:[%s2854_s0 + %s2570_s22]]   ;;  %s2574_s22 = smov 28  }
  0x25   :  { %s2709_s4 = sld [smem:[%s2854_s0 + %s2571_s28]]   ;;  %s2575_s28 = smov 29  }
  0x26   :  { %s2714_s6 = sld [smem:[%s2854_s0 + %s2572_s7]]   ;;  %s2731_s7 = smov 0  }
  0x27   :  { %2868 = sst [smem:[#allocation11_spill]] %s2699_s20 }
  0x28   :  { %s2719_s20 = sld [smem:[%s2854_s0 + %s2573_s15]]  }
  0x2a   :  { %2869 = sst [smem:[#allocation12_spill]] %s2704_s27 }
  0x2b   :  { %2870 = sst [smem:[#allocation13_spill]] %s2709_s4 }
  0x2c   :  { %s2724_s27 = sld [smem:[%s2854_s0 + %s2574_s22]]  }
  0x2d   :  { %s2729_s4 = sld [smem:[%s2854_s0 + %s2575_s28]]  }
  0x2e LB: > { %s2217_s10 = sadd.s32 4294967295, %s2545_s7   ;;  %p2221_p0 = scmp.ge.s32.totalorder %s2545_s7, 1  ;;  %s2545_s7 = sphi %s2731_s7, %s70_s7  }
  0x2f   : > { %p832_p1 = scmp.lt.s32.totalorder %s2545_s7, 3 }
  0x31   : > { %p833_p2 = pnand %p2221_p0, %p832_p1 }
  0x32   : > { %v946_v0 = vld [vmem:[%s2594_s13] sm:$0xff] (!%p833_p2)  ;;  %s2222_s0 = sshll.u32 (!%p833_p2), %s2217_s10, 1  ;;  %v1039_v2 = vld [vmem:[%s2604_s21 + $0x8] sm:$0xff] (!%p833_p2)  ;;  %vm954_vm0 = vcmask (!%p833_p2), 64512   ;;  %v1040_v6 = vld [vmem:[%s2604_s21 + $0x10] sm:$0xff] (!%p833_p2)  ;;  %vm1049_vm1 = vcmask (!%p833_p2), 261120  }
  0x33   : > { %836 = sbr.rel (%p833_p2) target bundleno = 2681 (0xa79), region = 132  ;;  %v1038_v1 = vld [vmem:[%s2604_s21] sm:$0xff] (!%p833_p2)  ;;  %2330 = vmatprep.subr.mxu0 (!%p833_p2), %v946_v0  ;;  %p919_p3 = scmp.lt.s32.totalorder (!%p833_p2), %s2222_s0, 3  ;;  %v1041_v7 = vld [vmem:[%s2604_s21 + $0x18] sm:$0xff] (!%p833_p2)  ;;  %v1134_v10 = vld [vmem:[%s2614_s29 + $0x8] sm:$0xff] (!%p833_p2) }
  0x34   : > { %v2438_v3 = vpack.c.bf16 (!%p833_p2), %v1039_v2, %v1038_v1  ;;  %2331 = vmatpush3.msra.mxu0 (!%p833_p2), %v946_v0  ;;  %v2442_v8 = vpack.c.bf16 (!%p833_p2), %v1041_v7, %v1040_v6  ;;  %v1133_v9 = vld [vmem:[%s2614_s29] sm:$0xff] (!%p833_p2)  ;;  %v1135_v19 = vld [vmem:[%s2614_s29 + $0x10] sm:$0xff] (!%p833_p2)  ;;  %v1136_v20 = vld [vmem:[%s2614_s29 + $0x18] sm:$0xff] (!%p833_p2)  ;;  %s2871_s18 = sld [smem:[#allocation4_spill]] (!%p833_p2)  ;;  %s2872_s22 = sld [smem:[#allocation2_spill]] (!%p833_p2) }
  0x35   : > { %v2446_v11 = vpack.c.bf16 (!%p833_p2), %v1134_v10, %v1133_v9  ;;  %v2230_v12 = vld [vmem:[%s2599_s17] ss:$0 sm:$0xff] (!%p833_p2)  ;;  %v2450_v21 = vpack.c.bf16 (!%p833_p2), %v1136_v20, %v1135_v19  ;;  %v1319_v31 = vld [vmem:[%s2634_s19 + $0x8] sm:$0xff] (!%p833_p2)  ;;  %v1320_v42 = vld [vmem:[%s2634_s19 + $0x10] sm:$0xff] (!%p833_p2)  ;;  %s2873_s23 = sld [smem:[#allocation6_spill]] (!%p833_p2)  ;;  %s2874_s26 = sld [smem:[#allocation3_spill]] (!%p833_p2) }
  0x36   : > { %2439 = vmatprep.subr.bf16.mxu1 (!%p833_p2), %v2438_v3  ;;  %v2233_v22 = vld [vmem:[%s2609_s25] ss:$0 sm:$0xff] (!%p833_p2)  ;;  %v1321_v43 = vld [vmem:[%s2634_s19 + $0x18] sm:$0xff] (!%p833_p2)  ;;  %v1413_v46 = vld [vmem:[%s2644_s30 + $0x8] sm:$0xff] (!%p833_p2)  ;;  %s2875_s28 = sld [smem:[#allocation5_spill]] (!%p833_p2)  ;;  %s2876_s1 = sld [smem:[#allocation8_spill]] (!%p833_p2) }
  0x37   : > { %2441 = vmatpush3.bf16.msra.mxu1 (!%p833_p2), %v2438_v3  ;;  %2447 = vmatprep.subr.bf16.mxu0 (!%p833_p2), %v2446_v11  ;;  %v1227_v29 = vld [vmem:[%s2624_s8] sm:$0xff] (!%p833_p2)  ;;  %v2458_v44 = vpack.c.bf16 (!%p833_p2), %v1321_v43, %v1320_v42  ;;  %v1414_v55 = vld [vmem:[%s2644_s30 + $0x10] sm:$0xff] (!%p833_p2)  ;;  %v1415_v56 = vld [vmem:[%s2644_s30 + $0x18] sm:$0xff] (!%p833_p2)  ;;  %s2877_s2 = sld [smem:[#allocation10_spill]] (!%p833_p2)  ;;  %s2878_s10 = sld [smem:[#allocation7_spill]] (!%p833_p2) }
  0x38   : > { %2443 = vmatprep.subr.bf16.mxu1 (!%p833_p2), %v2442_v8  ;;  %v1318_v30 = vld [vmem:[%s2634_s19] sm:$0xff] (!%p833_p2)  ;;  %v2466_v57 = vpack.c.bf16 (!%p833_p2), %v1415_v56, %v1414_v55 }
  0x39   : > { %v2454_v32 = vpack.c.bf16 (!%p833_p2), %v1319_v31, %v1318_v30  ;;  %v2236_v33 = vld [vmem:[%s2619_s3] ss:$0 sm:$0xff] (!%p833_p2) }
  0x3a   : > { %s2884_s0 = smov (!%p919_p3, %s2222_s0), 3  ;;  %v1412_v45 = vld [vmem:[%s2644_s30] sm:$0xff]  ;;  %v1598_v3 = vld [vmem:[%s2871_s18 + $0x8] sm:$0xff] }
  0x3b   : > { %s2742_s11 = sshll.u32 %s2884_s0, 3  ;;  %2445 = vmatpush3.bf16.msra.mxu1 %v2442_v8  ;;  %v2462_v47 = vpack.c.bf16 %v1413_v46, %v1412_v45  ;;  %v2239_v48 = vld [vmem:[%s2629_s14] ss:$0 sm:$0xff]  ;;  %s2879_s0 = sld [smem:[#allocation12_spill]] }
  0x3c   : > { %s922_s15 = scalar_lea.vmem %s2584_s5, %s2742_s11  ;;  %2357 = vmatprep.subr.mxu1 %v1227_v29  ;;  %s928_s16 = scalar_lea.vmem %s2589_s9, %s2742_s11  ;;  %v2242_v58 = vld [vmem:[%s2639_s24] ss:$0 sm:$0xff] }
  0x3d   : > { %v2746_v4 = vld [vmem:[%s922_s15] sm:$0xff]  ;;  %v2748_v5 = vld [vmem:[%s922_s15 + $0x8] sm:$0xff]  ;;  %s940_s15 = scalar_lea.vmem %s2729_s4, %s2742_s11 }
  0x3e   : > { %2332 = vmatprep.mubr.msk.f32.mxu0 %vm954_vm0, %v2746_v4  ;;  %v944_v36 = vld [vmem:[%s928_s16] sm:$0xff]  ;;  %v945_v38 = vld [vmem:[%s928_s16 + $0x8] sm:$0xff]  ;;  %s2880_s16 = sld [smem:[#allocation9_spill]] }
  0x3f   : > { %2333 = vmatmul.mubr.msk.f32.vlgmr.msra.gmra.mrb[0].mxu0 %vm954_vm0, %v2748_v5  ;;  %v1506_v1 = vld [vmem:[%s2654_s12] sm:$0xff] }
  0x40   : > { %2449 = vmatpush3.bf16.msra.mxu0 %v2446_v11  ;;  %v1597_v2 = vld [vmem:[%s2871_s18] sm:$0xff] }
  0x41   : > { %2451 = vmatprep.subr.bf16.mxu0 %v2450_v21  ;;  %v2470_v6 = vpack.c.bf16 %v1598_v3, %v1597_v2  ;;  %v2245_v7 = vld [vmem:[%s2872_s22] ss:$0 sm:$0xff]  ;;  %s2881_s22 = sld [smem:[#allocation11_spill]] }
  0x42   : > { %v2267_v45 = vld [vmem:[%s2719_s20] ss:$0 sm:$0xff] }
  0x44   : > { %2453 = vmatpush3.bf16.msra.mxu0 %v2450_v21  ;;  %v2257_v55 = vld [vmem:[%s2880_s16] ss:$0 sm:$0xff] }
  0x45   : > { %2455 = vmatprep.subr.bf16.mxu0 %v2454_v32 }
 0x112   : > { %v2334_v13 = vpop.f32.mrb[0].mxu0 }
 0x113   : > { %v1033_v14 = vadd.f32 %v2334_v13, %v2230_v12  ;;  %v1027_v15 = vpop.f32.mrb[1].mxu0 }
 0x114   : > { %v1028_v16 = vadd.f32 %v2230_v12, %v1027_v15  ;;  %v1600_v15 = vld [vmem:[%s2871_s18 + $0x18] sm:$0xff] }
 0x115   : > { %v1037_v18 = vmax.f32 %v1033_v14, 0.0  ;;  %v1599_v14 = vld [vmem:[%s2871_s18 + $0x10] sm:$0xff] }
 0x116   : > { %v1036_v17 = vmax.f32 %v1028_v16, 0.0  ;;  %v2474_v16 = vpack.c.bf16 %v1600_v15, %v1599_v14 }
 0x118   : > { %2343 = vmatprep.mubr.msk.f32.mxu1 %vm1049_vm1, %v1036_v17  ;;  %v1691_v17 = vld [vmem:[%s2873_s23] sm:$0xff] }
 0x119   : > { %2344 = vmatmul.mubr.msk.f32.vlgmr.msra.gmra.mrb[0].mxu1 %vm1049_vm1, %v1037_v18  ;;  %v1692_v18 = vld [vmem:[%s2873_s23 + $0x8] sm:$0xff] }
 0x11a   : > { %2358 = vmatpush3.msra.mxu1 %v1227_v29 }
 0x11b   : > { %2463 = vmatprep.subr.bf16.mxu1 %v2462_v47 }
 0x1ec   : > { %v2345_v23 = vpop.f32.mrb[0].mxu1 }
 0x1ed   : > { %v1128_v24 = vadd.f32 %v2345_v23, %v2233_v22  ;;  %v1122_v25 = vpop.f32.mrb[1].mxu1 }
 0x1ee   : > { %v1123_v26 = vadd.f32 %v2233_v22, %v1122_v25  ;;  %v1693_v25 = vld [vmem:[%s2873_s23 + $0x10] sm:$0xff] }
 0x1ef   : > { %v1132_v28 = vmax.f32 %v1128_v24, 0.0 }
 0x1f0   : > { %v1131_v27 = vmax.f32 %v1123_v26, 0.0  ;;  %v1694_v26 = vld [vmem:[%s2873_s23 + $0x18] sm:$0xff] }
 0x1f2   : > { %2354 = vmatprep.mubr.msk.f32.mxu0 %vm1049_vm1, %v1131_v27  ;;  %v2482_v27 = vpack.c.bf16 %v1694_v26, %v1693_v25 }
 0x1f3   : > { %2355 = vmatmul.mubr.msk.f32.vlgmr.msra.gmra.mrb[2].mxu0 %vm1049_vm1, %v1132_v28  ;;  %v2251_v28 = vld [vmem:[%s2875_s28] ss:$0 sm:$0xff]  ;;  %s934_s28 = scalar_lea.vmem %s2724_s27, %s2742_s11 }
 0x1f4   : > { %2457 = vmatpush3.bf16.msra.mxu0 %v2454_v32 }
 0x1f5   : > { %2459 = vmatprep.subr.bf16.mxu0 %v2458_v44 }
 0x1f8   : > { %2461 = vmatpush3.bf16.msra.mxu0 %v2458_v44 }
 0x1f9   : > { %2384 = vmatprep.subr.mxu0 %v1506_v1 }
 0x2c6   : > { %v2356_v34 = vpop.f32.mrb[2].mxu0 }
 0x2c7   : > { %v1222_v35 = vadd.f32 %v2356_v34, %v2236_v33  ;;  %v1216_v37 = vpop.f32.mrb[3].mxu0 }
 0x2c8   : > { %v1217_v39 = vadd.f32 %v2236_v33, %v1216_v37  ;;  %v1877_v37 = vld [vmem:[%s2877_s2 + $0x8] sm:$0xff] }
 0x2c9   : > { %v2774_v41 = vadd.f32 %v1222_v35, %v945_v38  ;;  %v1785_v35 = vld [vmem:[%s2876_s1] sm:$0xff] }
 0x2ca   : > { %v2772_v40 = vadd.f32 %v1217_v39, %v944_v36  ;;  %v1876_v36 = vld [vmem:[%s2877_s2] sm:$0xff] }
 0x2cb   : > { %v2486_v38 = vpack.c.bf16 %v1877_v37, %v1876_v36  ;;  %v2254_v39 = vld [vmem:[%s2878_s10] ss:$0 sm:$0xff] }
 0x2cc   : > { %2359 = vmatprep.mubr.msk.f32.mxu1 %vm954_vm0, %v2772_v40 }
 0x2cd   : > { %2360 = vmatmul.mubr.msk.f32.vlgmr.msra.gmra.mrb[2].mxu1 %vm954_vm0, %v2774_v41 }
 0x2ce   : > { %2465 = vmatpush3.bf16.msra.mxu1 %v2462_v47 }
 0x2cf   : > { %2467 = vmatprep.subr.bf16.mxu1 %v2466_v57 }
 0x2d2   : > { %2469 = vmatpush3.bf16.msra.mxu1 %v2466_v57 }
 0x2d3   : > { %2471 = vmatprep.subr.bf16.mxu1 %v2470_v6 }
 0x3a0   : > { %v2361_v49 = vpop.f32.mrb[2].mxu1 }
 0x3a1   : > { %v1313_v50 = vadd.f32 %v2361_v49, %v2239_v48  ;;  %v1307_v51 = vpop.f32.mrb[3].mxu1 }
 0x3a2   : > { %v1308_v52 = vadd.f32 %v2239_v48, %v1307_v51  ;;  %v1878_v51 = vld [vmem:[%s2877_s2 + $0x10] sm:$0xff] }
 0x3a3   : > { %v1317_v54 = vmax.f32 %v1313_v50, 0.0 }
 0x3a4   : > { %v1316_v53 = vmax.f32 %v1308_v52, 0.0  ;;  %v1879_v52 = vld [vmem:[%s2877_s2 + $0x18] sm:$0xff] }
 0x3a6   : > { %2370 = vmatprep.mubr.msk.f32.mxu0 %vm1049_vm1, %v1316_v53  ;;  %v2490_v53 = vpack.c.bf16 %v1879_v52, %v1878_v51 }
 0x3a7   : > { %2371 = vmatmul.mubr.msk.f32.vlgmr.msra.gmra.mrb[4].mxu0 %vm1049_vm1, %v1317_v54 }
 0x3a8   : > { %2385 = vmatpush3.msra.mxu0 %v1506_v1  ;;  %v2260_v1 = vld [vmem:[%s2881_s22] ss:$0 sm:$0xff] }
 0x47a   : > { %v2372_v59 = vpop.f32.mrb[4].mxu0 }
 0x47b   : > { %v1407_v60 = vadd.f32 %v2372_v59, %v2242_v58  ;;  %v1401_v61 = vpop.f32.mrb[5].mxu0 }
 0x47c   : > { %v1402_v62 = vadd.f32 %v2242_v58, %v1401_v61 }
 0x47d   : > { %v1411_v0 = vmax.f32 %v1407_v60, 0.0 }
 0x47e   : > { %v1410_v63 = vmax.f32 %v1402_v62, 0.0  ;;  %v1972_v62 = vld [vmem:[%s2879_s0 + $0x10] sm:$0xff] }
 0x480   : > { %2381 = vmatprep.mubr.msk.f32.mxu1 %vm1049_vm1, %v1410_v63  ;;  %v1973_v63 = vld [vmem:[%s2879_s0 + $0x18] sm:$0xff] }
 0x481   : > { %2382 = vmatmul.mubr.msk.f32.vlgmr.msra.gmra.mrb[4].mxu1 %vm1049_vm1, %v1411_v0  ;;  %v2498_v0 = vpack.c.bf16 %v1973_v63, %v1972_v62 }
 0x482   : > { %2473 = vmatpush3.bf16.msra.mxu1 %v2470_v6 }
 0x483   : > { %2475 = vmatprep.subr.bf16.mxu1 %v2474_v16 }
 0x486   : > { %2477 = vmatpush3.bf16.msra.mxu1 %v2474_v16  ;;  %v2266_v16 = vld [vmem:[%s2714_s6] ss:$0 sm:$0xff] }
 0x487   : > { %2411 = vmatprep.subr.mxu1 %v1785_v35 }
 0x554   : > { %v2383_v8 = vpop.f32.mrb[4].mxu1 }
 0x555   : > { %v1501_v9 = vadd.f32 %v2383_v8, %v2245_v7  ;;  %v1495_v10 = vpop.f32.mrb[5].mxu1 }
 0x556   : > { %v1496_v11 = vadd.f32 %v2245_v7, %v1495_v10 }
 0x557   : > { %v2800_v13 = vadd.f32 %v1501_v9, %v2748_v5  ;;  %v2248_v5 = vld [vmem:[%s2874_s26] ss:$0 sm:$0xff]  ;;  %s2882_s26 = sld [smem:[#allocation13_spill]] }
 0x558   : > { %v2797_v12 = vadd.f32 %v1496_v11, %v2746_v4  ;;  %v2478_v4 = vpack.c.bf16 %v1692_v18, %v1691_v17 }
 0x55a   : > { %2386 = vmatprep.mubr.msk.f32.mxu0 %vm954_vm0, %v2797_v12  ;;  %2479 = vmatprep.subr.bf16.mxu0 %v2478_v4 }
 0x55b   : > { %2387 = vmatmul.mubr.msk.f32.vlgmr.msra.gmra.mrb[6].mxu0 %vm954_vm0, %v2800_v13 }
 0x55c   : > { %2481 = vmatpush3.bf16.msra.mxu0 %v2478_v4 }
 0x55d   : > { %2483 = vmatprep.subr.bf16.mxu0 %v2482_v27  ;;  %v2263_v10 = vld [vmem:[%s2882_s26] ss:$0 sm:$0xff] }
 0x560   : > { %2485 = vmatpush3.bf16.msra.mxu0 %v2482_v27 }
 0x561   : > { %2487 = vmatprep.subr.bf16.mxu0 %v2486_v38 }
 0x62e   : > { %v2388_v19 = vpop.f32.mrb[6].mxu0 }
 0x62f   : > { %v1592_v20 = vadd.f32 %v2388_v19, %v2248_v5  ;;  %v1586_v21 = vpop.f32.mrb[7].mxu0 }
 0x630   : > { %v1587_v22 = vadd.f32 %v2248_v5, %v1586_v21 }
 0x631   : > { %v1596_v24 = vmax.f32 %v1592_v20, 0.0 }
 0x632   : > { %v1595_v23 = vmax.f32 %v1587_v22, 0.0 }
 0x634   : > { %2397 = vmatprep.mubr.msk.f32.mxu1 %vm1049_vm1, %v1595_v23 }
 0x635   : > { %2398 = vmatmul.mubr.msk.f32.vlgmr.msra.gmra.mrb[6].mxu1 %vm1049_vm1, %v1596_v24 }
 0x636   : > { %2412 = vmatpush3.msra.mxu1 %v1785_v35 }
 0x708   : > { %v2399_v29 = vpop.f32.mrb[6].mxu1 }
 0x709   : > { %v1686_v30 = vadd.f32 %v2399_v29, %v2251_v28  ;;  %v1680_v31 = vpop.f32.mrb[7].mxu1 }
 0x70a   : > { %v1681_v32 = vadd.f32 %v2251_v28, %v1680_v31 }
 0x70b   : > { %v1690_v34 = vmax.f32 %v1686_v30, 0.0 }
 0x70c   : > { %v1689_v33 = vmax.f32 %v1681_v32, 0.0 }
 0x70e   : > { %2408 = vmatprep.mubr.msk.f32.mxu0 %vm1049_vm1, %v1689_v33 }
 0x70f   : > { %2409 = vmatmul.mubr.msk.f32.vlgmr.msra.gmra.mrb[8].mxu0 %vm1049_vm1, %v1690_v34 }
 0x710   : > { %2489 = vmatpush3.bf16.msra.mxu0 %v2486_v38 }
 0x711   : > { %2491 = vmatprep.subr.bf16.mxu0 %v2490_v53 }
 0x714   : > { %2493 = vmatpush3.bf16.msra.mxu0 %v2490_v53 }
 0x7e2   : > { %v2410_v42 = vpop.f32.mrb[8].mxu0 }
 0x7e3   : > { %v1780_v43 = vadd.f32 %v2410_v42, %v2254_v39  ;;  %v1774_v44 = vpop.f32.mrb[9].mxu0 }
 0x7e4   : > { %v1775_v46 = vadd.f32 %v2254_v39, %v1774_v44 }
 0x7e5   : > { %v1784_v47 = vadd.f32 %v1780_v43, %v2774_v41  ;;  %v1970_v41 = vld [vmem:[%s2879_s0] sm:$0xff] }
 0x7e6   : > { %v1783_v48 = vadd.f32 %v1775_v46, %v2772_v40  ;;  %v1971_v40 = vld [vmem:[%s2879_s0 + $0x8] sm:$0xff] }
 0x7e7   : > { %v2083_v49 = vmul.f32 %v2267_v45, %v1784_v47  ;;  %v2494_v54 = vpack.c.bf16 %v1971_v40, %v1970_v41 }
 0x7e8   : > { %v2082_v50 = vmul.f32 %v2267_v45, %v1783_v48  ;;  %2413 = vmatprep.mubr.msk.f32.mxu1 %vm954_vm0, %v1783_v48 }
 0x7e9   : > { %2085 = vst.msk [vmem:[%s940_s15 + $0x8] sm:$0xff] %vm954_vm0, %v2083_v49  ;;  %2414 = vmatmul.mubr.msk.f32.vlgmr.msra.gmra.mrb[8].mxu1 %vm954_vm0, %v1784_v47  ;;  %2495 = vmatprep.subr.bf16.mxu1 %v2494_v54 }
 0x7ea   : > { %2084 = vst.msk [vmem:[%s940_s15] sm:$0xff] %vm954_vm0, %v2082_v50  ;;  %2497 = vmatpush3.bf16.msra.mxu1 %v2494_v54 }
 0x7eb   : > { %2499 = vmatprep.subr.bf16.mxu1 %v2498_v0 }
 0x7ee   : > { %2501 = vmatpush3.bf16.msra.mxu1 %v2498_v0 }
 0x8bc   : > { %v2415_v56 = vpop.f32.mrb[8].mxu1 }
 0x8bd   : > { %v1871_v57 = vadd.f32 %v2415_v56, %v2257_v55  ;;  %v1865_v58 = vpop.f32.mrb[9].mxu1 }
 0x8be   : > { %v1866_v59 = vadd.f32 %v2257_v55, %v1865_v58 }
 0x8bf   : > { %v1875_v61 = vmax.f32 %v1871_v57, 0.0 }
 0x8c0   : > { %v1874_v60 = vmax.f32 %v1866_v59, 0.0 }
 0x8c2   : > { %2424 = vmatprep.mubr.msk.f32.mxu0 %vm1049_vm1, %v1874_v60 }
 0x8c3   : > { %2425 = vmatmul.mubr.msk.f32.vlgmr.msra.gmra.mrb[10].mxu0 %vm1049_vm1, %v1875_v61 }
 0x996   : > { %v2426_v2 = vpop.f32.mrb[10].mxu0 }
 0x997   : > { %v1965_v3 = vadd.f32 %v2426_v2, %v2260_v1  ;;  %v1959_v6 = vpop.f32.mrb[11].mxu0 }
 0x998   : > { %v1960_v7 = vadd.f32 %v2260_v1, %v1959_v6 }
 0x999   : > { %v1969_v9 = vmax.f32 %v1965_v3, 0.0 }
 0x99a   : > { %v1968_v8 = vmax.f32 %v1960_v7, 0.0 }
 0x99c   : > { %2435 = vmatprep.mubr.msk.f32.mxu1 %vm1049_vm1, %v1968_v8 }
 0x99d   : > { %2436 = vmatmul.mubr.msk.f32.vlgmr.msra.gmra.mrb[10].mxu1 %vm1049_vm1, %v1969_v9 }
 0xa70   : > { %v2437_v11 = vpop.f32.mrb[10].mxu1 }
 0xa71   : > { %v2059_v14 = vadd.f32 %v2437_v11, %v2263_v10  ;;  %v2053_v15 = vpop.f32.mrb[11].mxu1 }
 0xa72   : > { %v2054_v17 = vadd.f32 %v2263_v10, %v2053_v15 }
 0xa73   : > { %v2063_v18 = vadd.f32 %v2059_v14, %v2800_v13 }
 0xa74   : > { %v2062_v4 = vadd.f32 %v2054_v17, %v2797_v12 }
 0xa75   : > { %v2072_v5 = vmul.f32 %v2266_v16, %v2063_v18 }
 0xa76   : > { %v2071_v19 = vmul.f32 %v2266_v16, %v2062_v4 }
 0xa77   : > { %2074 = vst.msk [vmem:[%s934_s28 + $0x8] sm:$0xff] %vm954_vm0, %v2072_v5 }
 0xa78   : > { %2073 = vst.msk [vmem:[%s934_s28] sm:$0xff] %vm954_vm0, %v2071_v19 }
 0xa79 PF: > { %s70_s7 = sadd.s32 1, %s2545_s7  }
 0xa7a   : > { %p67_p4 = scmp.ge.s32.totalorder %s70_s7, 4  }
 0xa7c   :  { %69 = sbr.rel (!%p67_p4) target bundleno = 46 (0x2e), region = 206 }

</bundles_post_ra>
